<compile_context>
chip_gen: v5e
topology: v5e:2x2
jax: 0.10.0
libtpu: 0.0.40
codegen_flags: <defaults>
</compile_context>

<pallas_src>
import functools
import math

import jax
import jax.numpy as jnp
from jax.experimental import pallas as pl
from jax.experimental.pallas import tpu as pltpu


_LANE = 128            # vreg lane width
_GRANULE = 16          # sublane granule safe for both f32 and bf16 tiles
_BM_PREF = 512         # preferred M tile (~85% of HBM roofline measured at 512)
_BM_FLOOR = 256        # don't shrink bm below this before tiling K instead
_SMALL_PROBLEM_FLOPS = 1 << 22   # below this, XLA's fused GEMM wins


def _round_up(x, m):
    return ((x + m - 1) // m) * m


def _vmem_capacity_bytes():
    try:
        info = pltpu.get_tpu_info()
        cap = int(getattr(info, "vmem_capacity_bytes", 0) or 0)
        if cap > 0:
            return cap
    except Exception:
        pass
    return 64 * 1024 * 1024    # conservative default (v7x per-TC VMEM)


def _plan_blocks(M, K, N, x_bytes, w_bytes, o_bytes, budget, block_m):
    """Pick (bm, bk, bn) so the double-buffered working set fits `budget`.

    Preference order:
      1. weight fully VMEM-resident (bk=K, bn=N), shrinking bm down to _BM_FLOOR;
      2. K tiling with an f32 accumulator (keeps bm large, full-N lane-dense stores);
      3. N tiling (weight re-streamed per M tile) as a last resort.
    Returns (bm, bk, bn, fits).
    """
    bm0 = _round_up(block_m if block_m is not None else _BM_PREF, _GRANULE)
    bm0 = min(bm0, _round_up(M, _GRANULE))
    # Keep >= 2 M tiles when the problem allows it: v7x shards "parallel" grid
    # axes across its 2 TensorCores.  Costs nothing on v5e/v6e.
    bm0 = max(_GRANULE, min(bm0, _round_up(pl.cdiv(M, 2), _GRANULE)))
    bm_floor = min(_BM_FLOOR, bm0)

    def tile_opts(total):
        cands = [total]
        if total % _LANE == 0:
            cands += [c for c in (2048, 1024, 512, 256, 128)
                      if c < total and total % c == 0]
        return cands

    def vmem_est(bm, bk, bn):
        x_t = bm * bk * x_bytes
        w_t = bk * bn * w_bytes
        o_t = bm * bn * o_bytes
        b_t = 8 * max(bn, _LANE) * 4
        acc = bm * bn * 4 if bk < K else 0        # single-buffered f32 scratch
        return 2 * (x_t + w_t + o_t + b_t) + acc

    for bn in tile_opts(N):            # full N first -> lane-dense, weight-resident
        for bk in tile_opts(K):        # full K first -> no reduction pass
            bm = bm0
            while True:
                if vmem_est(bm, bk, bn) <= budget:
                    return bm, bk, bn, True
                if bm <= bm_floor:
                    break
                bm = max(bm_floor, _round_up(bm // 2, _GRANULE))

    # Nothing fit: smallest everything; caller decides whether to fall back to XLA.
    bn = tile_opts(N)[-1]
    bk = tile_opts(K)[-1]
    bm = bm0
    while vmem_est(bm, bk, bn) > budget and bm > _GRANULE:
        bm = max(_GRANULE, _round_up(bm // 2, _GRANULE))
    return bm, bk, bn, vmem_est(bm, bk, bn) <= budget


def _linear_kernel(x_ref, w_ref, b_ref, o_ref):
    # Weight already (K, N) in HBM: plain MXU dot, no in-kernel transpose.
    acc = jnp.dot(x_ref[...], w_ref[...], preferred_element_type=jnp.float32)
    o_ref[...] = (acc + b_ref[...]).astype(o_ref.dtype)


def _linear_kernel_ktiled(x_ref, w_ref, b_ref, o_ref, acc_ref):
    k = pl.program_id(2)

    @pl.when(k == 0)
    def _():
        acc_ref[...] = jnp.zeros_like(acc_ref)

    acc_ref[...] += jnp.dot(x_ref[...], w_ref[...],
                            preferred_element_type=jnp.float32)

    @pl.when(k == pl.num_programs(2) - 1)
    def _():
        o_ref[...] = (acc_ref[...] + b_ref[...]).astype(o_ref.dtype)


@functools.partial(jax.jit,
                   static_argnames=("block_m", "compute_dtype", "force_pallas"))
def my_linear(features, A, weight, bias, *, block_m=None, compute_dtype=None,
              force_pallas=False):
    """Pallas forward of MyLinear.

    features: (B, T, N, in_dim); A: (B, N, N) accepted but unused (as in PyTorch);
    weight: (out_dim, in_dim); bias: (out_dim,). Returns (B, T, N, out_dim).

    For bf16 I/O pass bf16 `features` (no wrapper-side activation cast is done);
    `compute_dtype` casts only the weight.  MXU accumulation is always f32.
    """
    del A  # unused by the reference forward pass
    B, T, Nn, in_dim = features.shape
    out_dim, in_dim_w = weight.shape
    assert in_dim_w == in_dim
    out_dtype = features.dtype
    M = B * T * Nn

    # Tiny problems: pallas_call launch / pipeline prologue dominates -> XLA GEMM.
    if not force_pallas and 2 * M * in_dim * out_dim < _SMALL_PROBLEM_FLOPS:
        out = jnp.einsum("btni,oi->btno", features, weight) + bias
        return out.astype(out_dtype)

    x2d = features.reshape(M, in_dim)
    w = weight if compute_dtype is None else weight.astype(compute_dtype)
    b = bias.astype(jnp.float32)

    # ---- lane-density packing -------------------------------------------------
    # If out_dim < 128, fold `pack` consecutive rows together and use a
    # block-diagonal kron(I_pack, W^T) weight so every load/store is a full
    # 128-lane access.  Pad M to a multiple of pack if needed (dummy rows are
    # sliced off afterwards) instead of falling back to masked partial stores.
    pack = 1
    if out_dim < _LANE and _LANE % out_dim == 0:
        pack = _LANE // out_dim
    # TODO(synk): out_dim < 128 with 128 % out_dim != 0 still takes the masked-store
    # path; an lcm-based packing would cover it.

    M_pad = _round_up(M, pack)
    if pack > 1 and M_pad != M:
        x2d = jnp.pad(x2d, ((0, M_pad - M), (0, 0)))

    if pack > 1:
        M_eff, K_eff, N_eff = M_pad // pack, pack * in_dim, _LANE
        x_eff = x2d.reshape(M_eff, K_eff)                         # metadata-only
        # kron(I, W).T == kron(I, W.T): block-diagonal, already (K, N)-major.
        w_eff = jnp.kron(jnp.eye(pack, dtype=w.dtype), w.T)
        b_eff = jnp.tile(b, pack).reshape(1, N_eff)
    else:
        M_eff, K_eff, N_eff = M, in_dim, out_dim
        x_eff = x2d
        w_eff = w.T          # one-time (K, N) transpose copy of a small weight
        b_eff = b.reshape(1, N_eff)

    x_bytes = x_eff.dtype.itemsize
    w_bytes = w_eff.dtype.itemsize
    o_bytes = jnp.dtype(out_dtype).itemsize

    cap = _vmem_capacity_bytes()
    budget = (cap * 5) // 8          # tile working-set target
    limit = (cap * 3) // 4           # scoped-VMEM request (headroom for Mosaic scratch)

    bm, bk, bn, fits = _plan_blocks(M_eff, K_eff, N_eff,
                                    x_bytes, w_bytes, o_bytes, budget, block_m)
    if not fits and not force_pallas:
        # Graceful fallback instead of compile-failing / spilling on extreme shapes.
        out = jnp.einsum("btni,oi->btno", features, weight) + bias
        return out.astype(out_dtype)

    gm = pl.cdiv(M_eff, bm)
    gn = pl.cdiv(N_eff, bn)
    gk = K_eff // bk                 # bk always divides K_eff by construction
    grid = (gm, gn, gk)

    in_specs = [
        pl.BlockSpec((bm, bk), lambda i, j, k: (i, k)),     # activations
        pl.BlockSpec((bk, bn), lambda i, j, k: (k, j)),     # weight, (K, N) layout
        pl.BlockSpec((1, bn), lambda i, j, k: (0, j)),      # bias
    ]
    out_specs = pl.BlockSpec((bm, bn), lambda i, j, k: (i, j))

    if gk > 1:
        kernel = _linear_kernel_ktiled
        scratch = [pltpu.VMEM((bm, bn), jnp.float32)]
    else:
        kernel = _linear_kernel
        scratch = []

    # Advisory estimate; weight is only re-streamed when N or K is tiled.
    w_traffic = K_eff * N_eff * w_bytes * (gm if (gn > 1 or gk > 1) else 1)
    x_traffic = M_eff * K_eff * x_bytes * (gn if gk > 1 else 1)
    cost = pl.CostEstimate(
        flops=2 * M_eff * K_eff * N_eff,
        transcendentals=0,
        bytes_accessed=x_traffic + w_traffic + M_eff * N_eff * o_bytes + N_eff * 4,
    )

    out2d = pl.pallas_call(
        kernel,
        out_shape=jax.ShapeDtypeStruct((M_eff, N_eff), out_dtype),
        grid_spec=pltpu.PrefetchScalarGridSpec(
            num_scalar_prefetch=0,
            grid=grid,
            in_specs=in_specs,
            out_specs=out_specs,
            scratch_shapes=scratch,
        ),
        compiler_params=pltpu.CompilerParams(
            dimension_semantics=("parallel", "parallel", "arbitrary"),
            vmem_limit_bytes=limit,
        ),
        cost_estimate=cost,
    )(x_eff, w_eff, b_eff)

    if pack > 1:
        out2d = out2d.reshape(M_pad, out_dim)
        if M_pad != M:
            out2d = out2d[:M]
    return out2d.reshape(B, T, Nn, out_dim)


if __name__ == "__main__":
    # Small shapes implied by the module's forward docstring.
    batch, time_steps, num_nodes, in_dim, out_dim = 2, 8, 4, 32, 32

    key = jax.random.PRNGKey(0)
    k_feat, k_a, k_w, k_b = jax.random.split(key, 4)

    features = jax.random.normal(
        k_feat, (batch, time_steps, num_nodes, in_dim), jnp.float32)
    A = jax.random.normal(k_a, (batch, num_nodes, num_nodes), jnp.float32)

    # Deterministic param init mimicking torch.nn.Linear (uniform +-1/sqrt(in_dim)).
    bound = 1.0 / math.sqrt(in_dim)
    weight = jax.random.uniform(k_w, (out_dim, in_dim), jnp.float32, -bound, bound)
    bias = jax.random.uniform(k_b, (out_dim,), jnp.float32, -bound, bound)

    ref = features @ weight.T + bias

    # 1) Pallas path, lane-packed (out_dim=32 -> 4 rows folded per 128-lane store).
    out = jax.block_until_ready(my_linear(features, A, weight, bias, force_pallas=True))
    assert out.shape == (batch, time_steps, num_nodes, out_dim)
    assert jnp.allclose(out, ref, atol=1e-4, rtol=1e-4), float(jnp.max(jnp.abs(out - ref)))

    # 2) Default dispatch: problem is below the Pallas threshold -> exact XLA GEMM.
    out_small = jax.block_until_ready(my_linear(features, A, weight, bias))
    assert jnp.allclose(out_small, ref, atol=1e-5, rtol=1e-5)

    # 3) Un-packed Pallas path (out_dim >= 128), weight fully VMEM-resident, >=2 M tiles.
    in2, out2 = 128, 256
    bound2 = 1.0 / math.sqrt(in2)
    f2 = jax.random.normal(k_feat, (batch, time_steps, num_nodes, in2), jnp.float32)
    w2 = jax.random.uniform(k_w, (out2, in2), jnp.float32, -bound2, bound2)
    b2 = jax.random.uniform(k_b, (out2,), jnp.float32, -bound2, bound2)
    ref2 = f2 @ w2.T + b2
    out2_arr = jax.block_until_ready(my_linear(f2, A, w2, b2, force_pallas=True))
    assert jnp.allclose(out2_arr, ref2, atol=1e-4, rtol=1e-4)

    # 4) bf16 I/O: caller supplies bf16 features (no wrapper-side activation cast);
    #    compute_dtype casts only the weight; f32 MXU accumulation. Loose tolerance.
    f_bf16 = features.astype(jnp.bfloat16)
    out_bf16 = jax.block_until_ready(
        my_linear(f_bf16, A, weight, bias, compute_dtype=jnp.bfloat16, force_pallas=True))
    assert out_bf16.shape == ref.shape
    assert jnp.allclose(out_bf16.astype(jnp.float32), ref, atol=1e-1, rtol=5e-2)

    print("KERNEL_OK")
</pallas_src>

<mosaic_0001>
module attributes {stable_mosaic.version = 11 : i64} {
  func.func @_linear_kernel(%arg0: i32, %arg1: i32, %arg2: i32, %arg3: memref<16x128xf32, #tpu.memory_space<vmem>>, %arg4: memref<128x128xf32, #tpu.memory_space<vmem>>, %arg5: memref<1x128xf32, #tpu.memory_space<vmem>>, %arg6: memref<16x128xf32, #tpu.memory_space<vmem>>) attributes {dimension_semantics = [#tpu.dimension_semantics<parallel>, #tpu.dimension_semantics<parallel>, #tpu.dimension_semantics<arbitrary>], iteration_bounds = array<i64: 1, 1, 1>, scalar_prefetch = 0 : i64, scratch_operands = 0 : i64, tpu.core_type = #tpu.core_type<tc>, window_params = [{transform_indices = @transform_0, window_bounds = array<i64: 16, 128>}, {transform_indices = @transform_1, window_bounds = array<i64: 128, 128>}, {transform_indices = @transform_2, window_bounds = array<i64: 1, 128>}, {transform_indices = @transform_3, window_bounds = array<i64: 16, 128>}]} {
    %c0 = arith.constant 0 : index
    %c0_0 = arith.constant 0 : index
    %0 = vector.load %arg3[%c0, %c0_0] : memref<16x128xf32, #tpu.memory_space<vmem>>, vector<16x128xf32>
    %c0_1 = arith.constant 0 : index
    %c0_2 = arith.constant 0 : index
    %1 = vector.load %arg4[%c0_1, %c0_2] : memref<128x128xf32, #tpu.memory_space<vmem>>, vector<128x128xf32>
    %cst = arith.constant dense<0.000000e+00> : vector<16x128xf32>
    %2 = tpu.matmul %0, %1, %cst {dimension_numbers = #tpu.dot_dimension_numbers<[1], [0], [0], [1], [0, 0, 1, 1], [], []>} : vector<16x128xf32>, vector<128x128xf32>, vector<16x128xf32> -> vector<16x128xf32>
    %c0_3 = arith.constant 0 : index
    %c0_4 = arith.constant 0 : index
    %3 = vector.load %arg5[%c0_3, %c0_4] : memref<1x128xf32, #tpu.memory_space<vmem>>, vector<1x128xf32>
    %4 = vector.broadcast %3 : vector<1x128xf32> to vector<16x128xf32>
    %5 = arith.addf %2, %4 : vector<16x128xf32>
    %c0_5 = arith.constant 0 : index
    %c0_6 = arith.constant 0 : index
    %6 = vector.load %arg6[%c0_5, %c0_6] : memref<16x128xf32, #tpu.memory_space<vmem>>, vector<16x128xf32>
    tpu.vector_store %arg6[%c0_5, %c0_6], %5 {strides = array<i32>} : memref<16x128xf32, #tpu.memory_space<vmem>>, vector<16x128xf32>,
    return
  }
  func.func @transform_0(%arg0: i32, %arg1: i32, %arg2: i32) -> (i32, i32) {
    %c0_i32 = arith.constant 0 : i32
    return %arg0, %arg2 : i32, i32
  }
  func.func @transform_1(%arg0: i32, %arg1: i32, %arg2: i32) -> (i32, i32) {
    %c0_i32 = arith.constant 0 : i32
    return %arg2, %arg1 : i32, i32
  }
  func.func @transform_2(%arg0: i32, %arg1: i32, %arg2: i32) -> (i32, i32) {
    %c0_i32 = arith.constant 0 : i32
    %c0_i32_0 = arith.constant 0 : i32
    return %c0_i32, %arg1 : i32, i32
  }
  func.func @transform_3(%arg0: i32, %arg1: i32, %arg2: i32) -> (i32, i32) {
    %c0_i32 = arith.constant 0 : i32
    return %arg0, %arg1 : i32, i32
  }
}

</mosaic_0001>

<bundles_post_ra>
// kernel: tile.8
= control target key start
LH: loop header
LB: loop body
LE: loop exit
PB: predicated region body
PF: predicated region fallthrough
CT: control target
= control target key end

     0   :  { %s22_s0 = inlined_call_operand.vmem [shape: f32[32], index: 0, kind: input, shape index: {}]   ;;  %s23_s1 = inlined_call_operand.vmem [shape: f32[4,32], index: 1, kind: output, shape index: {}]  }
   0x1   :  { %v4_v0 = vld [vmem:[%s22_s0] ss:$0 sm:$0xff] }
   0x2   :  { %5 = vst [vmem:[%s23_s1] sm:$0xf] %v4_v0 }

// kernel: tile.9
= control target key start
LH: loop header
LB: loop body
LE: loop exit
PB: predicated region body
PF: predicated region fallthrough
CT: control target
= control target key end

     0   :  { %s37_s8 = smov 32   ;;  %s38_s9 = smov 64   ;;  %vm7_vm0 = vcmask 261120   ;;  %vm13_vm1 = vcmask 1048320   ;;  %vm19_vm2 = vcmask 785920   ;;  %vm25_vm3 = vcmask 523520   ;;  %s55_s0 = inlined_call_operand.vmem [shape: f32[4,32], index: 0, kind: input, shape index: {}]   ;;  %s56_s1 = inlined_call_operand.vmem [shape: f32[1,128], index: 1, kind: output, shape index: {}]  }
   0x1   :  { %v4_v0 = vld [vmem:[%s55_s0] sm:$0xf]  ;;  %s36_s0 = smov 96  }
   0x2   :  { %5 = vst [vmem:[#allocation1] sm:$0xf] %v4_v0 }
   0x9   :  { %v10_v1 = vld [vmem:[#allocation1 + $0x3] sm:$0x1]   ;;  %v22_v2 = vld [vmem:[#allocation1 + $0x1] sm:$0x1]   ;;  %v16_v3 = vld [vmem:[#allocation1 + $0x2] sm:$0x1]  }
   0xa   :  { %11 = vrot.lane.b32.xlu0 %v10_v1, %s36_s0  ;;  %23 = vrot.lane.b32.xlu1 %v22_v2, %s37_s8  ;;  %v6_v4 = vld [vmem:[#allocation1] sm:$0x1]  }
   0xb   :  { %8 = vst.msk [vmem:[#allocation0] sm:$0x1] %vm7_vm0, %v6_v4  }
  0x12   :  { %17 = vrot.lane.b32.xlu0 %v16_v3, %s38_s9 }
  0x7c   :  { %v12_v5 = vpop.permute.xlu0 %11   ;;  %v24_v6 = vpop.permute.xlu1 %23  }
  0x7d   :  { %14 = vst.msk [vmem:[#allocation0] sm:$0x1] %vm13_vm1, %v12_v5  }
  0x84   :  { %v18_v7 = vpop.permute.xlu0 %17  }
  0x85   :  { %20 = vst.msk [vmem:[#allocation0] sm:$0x1] %vm19_vm2, %v18_v7  }
  0x86   :  { %26 = vst.msk [vmem:[#allocation0] sm:$0x1] %vm25_vm3, %v24_v6  }
  0x8d   :  { %v29_v8 = vld [vmem:[#allocation0] sm:$0x1] }
  0x8e   :  { %32 = vst [vmem:[%s56_s1] sm:$0x1] %v29_v8 }

// kernel: my_linear.1
= control target key start
LH: loop header
LB: loop body
LE: loop exit
PB: predicated region body
PF: predicated region fallthrough
CT: control target
= control target key end

     0   :  { %s165_s1 = inlined_call_operand.vmem [shape: f32[128,128], index: 1, kind: input, shape index: {}]   ;;  %s166_s2 = inlined_call_operand.vmem [shape: f32[1,128], index: 2, kind: input, shape index: {}]   ;;  %s167_s0 = inlined_call_operand.vmem [shape: f32[16,128], index: 0, kind: input, shape index: {}]   ;;  %s168_s3 = inlined_call_operand.vmem [shape: f32[16,128], index: 3, kind: output, shape index: {}]  }
   0x1   :  { %v31_v0 = vld [vmem:[%s165_s1 + $0x78] sm:$0xff]  ;;  %v30_v1 = vld [vmem:[%s165_s1 + $0x70] sm:$0xff]  ;;  %v29_v2 = vld [vmem:[%s165_s1 + $0x68] sm:$0xff] }
   0x2   :  { %36 = vmatpush.msra.mxu0 %v31_v0  ;;  %65 = vmatpush.msra.mxu1 %v31_v0  ;;  %v28_v3 = vld [vmem:[%s165_s1 + $0x60] sm:$0xff]  ;;  %v27_v4 = vld [vmem:[%s165_s1 + $0x58] sm:$0xff]  ;;  %v26_v5 = vld [vmem:[%s165_s1 + $0x50] sm:$0xff] }
   0x3   :  { %v25_v6 = vld [vmem:[%s165_s1 + $0x48] sm:$0xff]  ;;  %v24_v7 = vld [vmem:[%s165_s1 + $0x40] sm:$0xff]  ;;  %v23_v8 = vld [vmem:[%s165_s1 + $0x38] sm:$0xff] }
   0x4   :  { %37 = vmatpush.msra.mxu0 %v30_v1  ;;  %66 = vmatpush.msra.mxu1 %v30_v1  ;;  %v22_v9 = vld [vmem:[%s165_s1 + $0x30] sm:$0xff]  ;;  %v21_v10 = vld [vmem:[%s165_s1 + $0x28] sm:$0xff]  ;;  %v20_v11 = vld [vmem:[%s165_s1 + $0x20] sm:$0xff] }
   0x5   :  { %v19_v12 = vld [vmem:[%s165_s1 + $0x18] sm:$0xff]  ;;  %v18_v13 = vld [vmem:[%s165_s1 + $0x10] sm:$0xff]  ;;  %v17_v14 = vld [vmem:[%s165_s1 + $0x8] sm:$0xff] }
   0x6   :  { %38 = vmatpush.msra.mxu0 %v29_v2  ;;  %67 = vmatpush.msra.mxu1 %v29_v2  ;;  %v16_v15 = vld [vmem:[%s165_s1] sm:$0xff]  ;;  %v15_v17 = vld [vmem:[%s167_s0 + $0x8] sm:$0xff] }
   0x7   :  { %v14_v16 = vld [vmem:[%s167_s0] sm:$0xff] }
   0x8   :  { %39 = vmatpush.msra.mxu0 %v28_v3  ;;  %68 = vmatpush.msra.mxu1 %v28_v3  ;;  %v81_v18 = vld [vmem:[%s166_s2] ss:$0 sm:$0xff] }
   0xa   :  { %40 = vmatpush.msra.mxu0 %v27_v4  ;;  %69 = vmatpush.msra.mxu1 %v27_v4 }
   0xc   :  { %41 = vmatpush.msra.mxu0 %v26_v5  ;;  %70 = vmatpush.msra.mxu1 %v26_v5 }
   0xe   :  { %42 = vmatpush.msra.mxu0 %v25_v6  ;;  %71 = vmatpush.msra.mxu1 %v25_v6 }
  0x10   :  { %43 = vmatpush.msra.mxu0 %v24_v7  ;;  %72 = vmatpush.msra.mxu1 %v24_v7 }
  0x12   :  { %44 = vmatpush.msra.mxu0 %v23_v8  ;;  %73 = vmatpush.msra.mxu1 %v23_v8 }
  0x14   :  { %45 = vmatpush.msra.mxu0 %v22_v9  ;;  %74 = vmatpush.msra.mxu1 %v22_v9 }
  0x16   :  { %46 = vmatpush.msra.mxu0 %v21_v10  ;;  %75 = vmatpush.msra.mxu1 %v21_v10 }
  0x18   :  { %47 = vmatpush.msra.mxu0 %v20_v11  ;;  %76 = vmatpush.msra.mxu1 %v20_v11 }
  0x1a   :  { %48 = vmatpush.msra.mxu0 %v19_v12  ;;  %77 = vmatpush.msra.mxu1 %v19_v12 }
  0x1c   :  { %49 = vmatpush.msra.mxu0 %v18_v13  ;;  %78 = vmatpush.msra.mxu1 %v18_v13 }
  0x1e   :  { %50 = vmatpush.msra.mxu0 %v17_v14  ;;  %79 = vmatpush.msra.mxu1 %v17_v14 }
  0x20   :  { %51 = vmatpush.msra.mxu0 %v16_v15  ;;  %80 = vmatpush.msra.mxu1 %v16_v15 }
  0x21   :  { %52 = vmatmul.f32.vlgmr.msra.gmra.mxu0 %v14_v16  ;;  %55 = vmatmul.f32.vlgmr.msra.gmra.mxu1 %v15_v17 }
  0x9e   :  { %v53_v19 = vpop.f32.mrf.mxu0  ;;  %v56_v20 = vpop.f32.mrf.mxu1 }
  0x9f   :  { %v54_v21 = vadd.f32 %v81_v18, %v53_v19  ;;  %v57_v22 = vadd.f32 %v81_v18, %v56_v20 }
  0xa1   :  { %59 = vst [vmem:[%s168_s3] sm:$0xff] %v54_v21 }
  0xa2   :  { %60 = vst [vmem:[%s168_s3 + $0x8] sm:$0xff] %v57_v22 }

</bundles_post_ra>
